<compile_context>
chip_gen: v7x
topology: tpu7x:2x2x1
jax: 0.10.0
libtpu: 0.0.40
codegen_flags: <defaults>
</compile_context>

<pallas_src>
import functools

import jax
import jax.numpy as jnp
from jax.experimental import pallas as pl
from jax.experimental.pallas import tpu as pltpu

SLAB = 128  # latent output slab width (one full lane group)


# ----------------------------- kernel body ---------------------------------


def _vae_kernel(lat_dim,
                x_ref, eps_ref,
                w1_ref, b1_ref, w2_ref, b2_ref, wh_ref, bh_ref,
                w4_ref, b4_ref, w5_ref, b5_ref, w6_ref, b6_ref,
                plv_ref, pz_ref,
                recon_ref, lat_ref, eps_buf):
    def mm(a, w_ref):
        w = w_ref[...]
        return jnp.dot(a.astype(w.dtype), w, preferred_element_type=jnp.float32)

    slab = lat_ref.shape[-1]                                # 128

    # ---- encode ----
    h1 = jnp.maximum(mm(x_ref[...], w1_ref) + b1_ref[...], 0.0)   # relu(fc1)
    h2 = jnp.maximum(mm(h1, w2_ref) + b2_ref[...], 0.0)           # relu(fc2)

    # fused fc31 || fc32 head: one MXU pass, split at a 128-lane boundary.
    head = mm(h2, wh_ref) + bh_ref[...]
    mu = head[:, :slab]                                 # lanes >= lat_dim are 0
    logvar = jnp.clip(head[:, slab:], -5.0, 5.0)        # torch.clamp; pads stay 0

    # ---- reparameterize ----
    std = jnp.exp(0.5 * logvar)                         # EUP; padded lanes -> 1
    eps_buf[...] = jnp.zeros(eps_buf.shape, eps_buf.dtype)
    eps_buf[:, :lat_dim] = eps_ref[...]                 # widen eps; pads stay 0
    z = mu + eps_buf[...] * std                         # pads: 0 + 0*1 = 0

    # ---- decode ---- (zero-padded rows/cols of w4/w5 are inert)
    h4 = jnp.maximum(mm(z, w4_ref) + b4_ref[...], 0.0)            # relu(fc4)
    h5 = jnp.maximum(mm(h4, w5_ref) + b5_ref[...], 0.0)           # relu(fc5)
    recon_ref[...] = (mm(h5, w6_ref) + b6_ref[...]).astype(recon_ref.dtype)

    # ---- pack latent slab: [ mu | logvar | z | 0... ] in 128 lanes ----
    # Selector matmuls move logvar/z to lanes [L,2L)/[2L,3L); mu already owns
    # lanes [0,L) and is zero elsewhere, so a plain add composes the slab.
    lat = (mu
           + jnp.dot(logvar, plv_ref[...], preferred_element_type=jnp.float32)
           + jnp.dot(z, pz_ref[...], preferred_element_type=jnp.float32))
    lat_ref[...] = lat.astype(lat_ref.dtype)


# ----------------------------- host helpers --------------------------------


def _round_up(n, m):
    return ((n + m - 1) // m) * m


def _pad2(a, rows, cols):
    r, c = a.shape
    return jnp.pad(a, ((0, rows - r), (0, cols - c)))


def pack_params(params, *, mm_dtype=jnp.float32):
    """Pad / fuse the module parameters into the kernel's padded layout.

    Zero-padding is load-bearing: padded head columns/bias (mu/logvar lanes),
    padded w2/w4/w5 rows/cols and padded b2/b4 must be zero so padded hidden
    and latent lanes stay inert. Biases stay float32 (added post-accumulation).
    """
    D, H1 = params["w1"].shape          # (input_dim, 128)
    H2 = params["w2"].shape[1]          # 64
    L = params["w31"].shape[1]          # latent_dim
    assert 3 * L <= SLAB, "latent packing assumes 3*latent_dim <= 128"
    H2p = _round_up(H2, 128)

    w_head = jnp.concatenate(
        [_pad2(params["w31"], H2p, SLAB), _pad2(params["w32"], H2p, SLAB)], axis=1)
    b_head = jnp.concatenate(
        [_pad2(params["b31"], 1, SLAB), _pad2(params["b32"], 1, SLAB)], axis=1)

    wcast = lambda a: a.astype(mm_dtype)
    packed = {
        "w1": wcast(params["w1"]),                   "b1": params["b1"],
        "w2": wcast(_pad2(params["w2"], H1, H2p)),   "b2": _pad2(params["b2"], 1, H2p),
        "w_head": wcast(w_head),                     "b_head": b_head,
        "w4": wcast(_pad2(params["w4"], SLAB, H2p)), "b4": _pad2(params["b4"], 1, H2p),
        "w5": wcast(_pad2(params["w5"], H2p, H1)),   "b5": params["b5"],
        "w6": wcast(params["w6"]),                   "b6": params["b6"],
    }
    # Constant lane-packing selectors (kept float32 so mu/logvar/z stay exact
    # in the f32 path): p_lv maps lane i -> L+i, p_z maps lane i -> 2L+i.
    eye_l = jnp.eye(L, dtype=jnp.float32)
    packed["p_lv"] = jnp.zeros((SLAB, SLAB), jnp.float32).at[:L, L:2 * L].set(eye_l)
    packed["p_z"] = jnp.zeros((SLAB, SLAB), jnp.float32).at[:L, 2 * L:3 * L].set(eye_l)
    return packed, (D, L, H1, H2p)


def vae_forward(x, eps, params, *, block_b=None, use_bf16=False):
    """Run the fused VAE forward Pallas kernel.

    x:      [B, input_dim] float32
    eps:    [B, latent_dim] float32 (the randn_like noise)
    params: dict of weights [in, out] and biases [1, out] (unpadded).
    Returns (recon, mu, logvar, z) matching the PyTorch module.
    """
    B, D = x.shape
    mm_dtype = jnp.bfloat16 if use_bf16 else jnp.float32
    packed, (D0, L, H1, H2p) = pack_params(params, mm_dtype=mm_dtype)
    assert D == D0 and eps.shape == (B, L)

    # Batch tile: multiple of 8 sublanes; aim for >=4 grid blocks so v7x's two
    # TensorCores both get work and the DMA pipeline overlaps; cap at 1024 so
    # double-buffered tiles stay well inside v7x's 64 MiB VMEM; never inflate
    # the padded batch past round_up(B, 8).
    if block_b is None:
        block_b = max(8, min(1024, _round_up(pl.cdiv(B, 4), 8)))
    block_b = max(8, min(_round_up(block_b, 8), _round_up(B, 8)))
    B_pad = _round_up(B, block_b)
    grid = (B_pad // block_b,)

    x_p = jnp.pad(x.astype(jnp.float32), ((0, B_pad - B), (0, 0)))
    eps_p = jnp.pad(eps.astype(jnp.float32), ((0, B_pad - B), (0, 0)))

    io_map = lambda i: (i, 0)      # batch-tiled arrays
    w_map = lambda i: (0, 0)       # weights: same block every step -> resident

    weight_order = ["w1", "b1", "w2", "b2", "w_head", "b_head",
                    "w4", "b4", "w5", "b5", "w6", "b6", "p_lv", "p_z"]
    weight_args = [packed[k] for k in weight_order]

    in_specs = ([pl.BlockSpec((block_b, D), io_map),     # x, last dim = full dim
                 pl.BlockSpec((block_b, L), io_map)]     # eps, last dim = full dim
                + [pl.BlockSpec(a.shape, w_map) for a in weight_args])
    out_specs = (pl.BlockSpec((block_b, D), io_map),        # recon (unpadded width)
                 pl.BlockSpec((block_b, SLAB), io_map))      # packed mu|logvar|z
    out_shape = (jax.ShapeDtypeStruct((B_pad, D), jnp.float32),
                 jax.ShapeDtypeStruct((B_pad, SLAB), jnp.float32))

    flops = 2 * B_pad * (D * H1 + H1 * H2p + H2p * 2 * SLAB
                         + SLAB * H2p + H2p * H1 + H1 * D + 2 * SLAB * SLAB)
    bytes_accessed = int(
        x_p.size * x_p.dtype.itemsize + eps_p.size * eps_p.dtype.itemsize
        + sum(int(a.size) * a.dtype.itemsize for a in weight_args)
        + (B_pad * D + B_pad * SLAB) * 4)

    recon_p, lat_p = pl.pallas_call(
        functools.partial(_vae_kernel, L),
        grid=grid,
        in_specs=in_specs,
        out_specs=out_specs,
        out_shape=out_shape,
        scratch_shapes=[pltpu.VMEM((block_b, SLAB), jnp.float32)],   # eps widening
        compiler_params=pltpu.CompilerParams(
            dimension_semantics=("parallel",),
            vmem_limit_bytes=32 * 1024 * 1024),
        cost_estimate=pl.CostEstimate(
            flops=flops,
            transcendentals=B_pad * SLAB,
            bytes_accessed=bytes_accessed),
    )(x_p, eps_p, *weight_args)

    recon = recon_p[:B]
    mu = lat_p[:B, 0 * L:1 * L]
    logvar = lat_p[:B, 1 * L:2 * L]
    z = lat_p[:B, 2 * L:3 * L]
    return recon, mu, logvar, z


# --------------------------- init & reference ------------------------------


def init_params(key, input_dim, latent_dim=5):
    """PyTorch-style uniform(-1/sqrt(fan_in), 1/sqrt(fan_in)) init.

    Weights are [in_features, out_features]; biases are [1, out_features].
    """
    dims = {
        "1": (input_dim, 128),
        "2": (128, 64),
        "31": (64, latent_dim),
        "32": (64, latent_dim),
        "4": (latent_dim, 64),
        "5": (64, 128),
        "6": (128, input_dim),
    }
    params = {}
    keys = jax.random.split(key, 2 * len(dims))
    for i, (name, (fan_in, fan_out)) in enumerate(dims.items()):
        bound = 1.0 / jnp.sqrt(jnp.float32(fan_in))
        params["w" + name] = jax.random.uniform(
            keys[2 * i], (fan_in, fan_out), jnp.float32, -bound, bound)
        params["b" + name] = jax.random.uniform(
            keys[2 * i + 1], (1, fan_out), jnp.float32, -bound, bound)
    return params


def vae_reference(x, eps, params):
    """Pure-JAX reference of the same forward pass (sanity check)."""
    relu = lambda v: jnp.maximum(v, 0.0)
    h1 = relu(x @ params["w1"] + params["b1"])
    h2 = relu(h1 @ params["w2"] + params["b2"])
    mu = h2 @ params["w31"] + params["b31"]
    logvar = jnp.clip(h2 @ params["w32"] + params["b32"], -5.0, 5.0)
    z = mu + eps * jnp.exp(0.5 * logvar)
    h4 = relu(z @ params["w4"] + params["b4"])
    h5 = relu(h4 @ params["w5"] + params["b5"])
    recon = h5 @ params["w6"] + params["b6"]
    return recon, mu, logvar, z


# --------------------------------- main -------------------------------------


if __name__ == "__main__":
    B = 64
    INPUT_DIM = 32
    LATENT_DIM = 5

    key = jax.random.PRNGKey(0)
    k_param, k_x, k_eps = jax.random.split(key, 3)

    params = init_params(k_param, INPUT_DIM, LATENT_DIM)
    x = jax.random.normal(k_x, (B, INPUT_DIM), jnp.float32)
    # torch.randn_like(std): the Gaussian noise is generated deterministically
    # outside the kernel and passed in, matching reparameterization semantics.
    eps = jax.random.normal(k_eps, (B, LATENT_DIM), jnp.float32)

    # Default tiling: block_b=16 -> grid=(4,): exercises the batch-parallel path.
    recon, mu, logvar, z = jax.block_until_ready(vae_forward(x, eps, params))

    # Sanity check against pure-JAX reference (f32 path).
    r_ref, mu_ref, lv_ref, z_ref = vae_reference(x, eps, params)
    assert recon.shape == (B, INPUT_DIM)
    assert mu.shape == (B, LATENT_DIM)
    assert logvar.shape == (B, LATENT_DIM)
    assert z.shape == (B, LATENT_DIM)
    assert jnp.allclose(recon, r_ref, atol=1e-3)
    assert jnp.allclose(mu, mu_ref, atol=1e-4)
    assert jnp.allclose(logvar, lv_ref, atol=1e-4)
    assert jnp.allclose(z, z_ref, atol=1e-4)

    # Optional bf16 MXU path (opt-in; looser numerics by construction).
    recon16, mu16, lv16, z16 = jax.block_until_ready(
        vae_forward(x, eps, params, use_bf16=True))
    assert recon16.shape == (B, INPUT_DIM)
    assert bool(jnp.all(jnp.isfinite(recon16)))
    assert jnp.allclose(recon16, r_ref, atol=0.5, rtol=0.1)
    assert jnp.allclose(mu16, mu_ref, atol=0.5, rtol=0.1)

    print("KERNEL_OK")
</pallas_src>

<mosaic_0001>
module attributes {stable_mosaic.version = 11 : i64} {
  func.func @_vae_kernel(%arg0: i32, %arg1: memref<16x32xf32, #tpu.memory_space<vmem>>, %arg2: memref<16x5xf32, #tpu.memory_space<vmem>>, %arg3: memref<32x128xf32, #tpu.memory_space<vmem>>, %arg4: memref<1x128xf32, #tpu.memory_space<vmem>>, %arg5: memref<128x128xf32, #tpu.memory_space<vmem>>, %arg6: memref<1x128xf32, #tpu.memory_space<vmem>>, %arg7: memref<128x256xf32, #tpu.memory_space<vmem>>, %arg8: memref<1x256xf32, #tpu.memory_space<vmem>>, %arg9: memref<128x128xf32, #tpu.memory_space<vmem>>, %arg10: memref<1x128xf32, #tpu.memory_space<vmem>>, %arg11: memref<128x128xf32, #tpu.memory_space<vmem>>, %arg12: memref<1x128xf32, #tpu.memory_space<vmem>>, %arg13: memref<128x32xf32, #tpu.memory_space<vmem>>, %arg14: memref<1x32xf32, #tpu.memory_space<vmem>>, %arg15: memref<128x128xf32, #tpu.memory_space<vmem>>, %arg16: memref<128x128xf32, #tpu.memory_space<vmem>>, %arg17: memref<16x32xf32, #tpu.memory_space<vmem>>, %arg18: memref<16x128xf32, #tpu.memory_space<vmem>>, %arg19: memref<16x128xf32, #tpu.memory_space<vmem>>) attributes {dimension_semantics = [#tpu.dimension_semantics<parallel>], iteration_bounds = array<i64: 4>, scalar_prefetch = 0 : i64, scratch_operands = 1 : i64, tpu.core_type = #tpu.core_type<tc>, window_params = [{transform_indices = @transform_0, window_bounds = array<i64: 16, 32>}, {transform_indices = @transform_1, window_bounds = array<i64: 16, 5>}, {pipeline_mode = #tpu.pipeline_mode<synchronous>, transform_indices = @transform_2, window_bounds = array<i64: 32, 128>}, {pipeline_mode = #tpu.pipeline_mode<synchronous>, transform_indices = @transform_3, window_bounds = array<i64: 1, 128>}, {pipeline_mode = #tpu.pipeline_mode<synchronous>, transform_indices = @transform_4, window_bounds = array<i64: 128, 128>}, {pipeline_mode = #tpu.pipeline_mode<synchronous>, transform_indices = @transform_5, window_bounds = array<i64: 1, 128>}, {pipeline_mode = #tpu.pipeline_mode<synchronous>, transform_indices = @transform_6, window_bounds = array<i64: 128, 256>}, {pipeline_mode = #tpu.pipeline_mode<synchronous>, transform_indices = @transform_7, window_bounds = array<i64: 1, 256>}, {pipeline_mode = #tpu.pipeline_mode<synchronous>, transform_indices = @transform_8, window_bounds = array<i64: 128, 128>}, {pipeline_mode = #tpu.pipeline_mode<synchronous>, transform_indices = @transform_9, window_bounds = array<i64: 1, 128>}, {pipeline_mode = #tpu.pipeline_mode<synchronous>, transform_indices = @transform_10, window_bounds = array<i64: 128, 128>}, {pipeline_mode = #tpu.pipeline_mode<synchronous>, transform_indices = @transform_11, window_bounds = array<i64: 1, 128>}, {pipeline_mode = #tpu.pipeline_mode<synchronous>, transform_indices = @transform_12, window_bounds = array<i64: 128, 32>}, {pipeline_mode = #tpu.pipeline_mode<synchronous>, transform_indices = @transform_13, window_bounds = array<i64: 1, 32>}, {pipeline_mode = #tpu.pipeline_mode<synchronous>, transform_indices = @transform_14, window_bounds = array<i64: 128, 128>}, {pipeline_mode = #tpu.pipeline_mode<synchronous>, transform_indices = @transform_15, window_bounds = array<i64: 128, 128>}, {transform_indices = @transform_16, window_bounds = array<i64: 16, 32>}, {transform_indices = @transform_17, window_bounds = array<i64: 16, 128>}]} {
    %c0 = arith.constant 0 : index
    %c0_0 = arith.constant 0 : index
    %0 = vector.load %arg1[%c0, %c0_0] : memref<16x32xf32, #tpu.memory_space<vmem>>, vector<16x32xf32>
    %c0_1 = arith.constant 0 : index
    %c0_2 = arith.constant 0 : index
    %1 = vector.load %arg3[%c0_1, %c0_2] : memref<32x128xf32, #tpu.memory_space<vmem>>, vector<32x128xf32>
    %cst = arith.constant dense<0.000000e+00> : vector<16x128xf32>
    %2 = tpu.matmul %0, %1, %cst {dimension_numbers = #tpu.dot_dimension_numbers<[1], [0], [0], [1], [0, 0, 1, 1], [], []>} : vector<16x32xf32>, vector<32x128xf32>, vector<16x128xf32> -> vector<16x128xf32>
    %c0_3 = arith.constant 0 : index
    %c0_4 = arith.constant 0 : index
    %3 = vector.load %arg4[%c0_3, %c0_4] : memref<1x128xf32, #tpu.memory_space<vmem>>, vector<1x128xf32>
    %4 = vector.broadcast %3 : vector<1x128xf32> to vector<16x128xf32>
    %5 = arith.addf %2, %4 : vector<16x128xf32>
    %cst_5 = arith.constant 0.000000e+00 : f32
    %6 = vector.broadcast %cst_5 : f32 to vector<16x128xf32>
    %7 = arith.maximumf %5, %6 : vector<16x128xf32>
    %c0_6 = arith.constant 0 : index
    %c0_7 = arith.constant 0 : index
    %8 = vector.load %arg5[%c0_6, %c0_7] : memref<128x128xf32, #tpu.memory_space<vmem>>, vector<128x128xf32>
    %cst_8 = arith.constant dense<0.000000e+00> : vector<16x128xf32>
    %9 = tpu.matmul %7, %8, %cst_8 {dimension_numbers = #tpu.dot_dimension_numbers<[1], [0], [0], [1], [0, 0, 1, 1], [], []>} : vector<16x128xf32>, vector<128x128xf32>, vector<16x128xf32> -> vector<16x128xf32>
    %c0_9 = arith.constant 0 : index
    %c0_10 = arith.constant 0 : index
    %10 = vector.load %arg6[%c0_9, %c0_10] : memref<1x128xf32, #tpu.memory_space<vmem>>, vector<1x128xf32>
    %11 = vector.broadcast %10 : vector<1x128xf32> to vector<16x128xf32>
    %12 = arith.addf %9, %11 : vector<16x128xf32>
    %cst_11 = arith.constant 0.000000e+00 : f32
    %13 = vector.broadcast %cst_11 : f32 to vector<16x128xf32>
    %14 = arith.maximumf %12, %13 : vector<16x128xf32>
    %c0_12 = arith.constant 0 : index
    %c0_13 = arith.constant 0 : index
    %15 = vector.load %arg7[%c0_12, %c0_13] : memref<128x256xf32, #tpu.memory_space<vmem>>, vector<128x256xf32>
    %cst_14 = arith.constant dense<0.000000e+00> : vector<16x256xf32>
    %16 = tpu.matmul %14, %15, %cst_14 {dimension_numbers = #tpu.dot_dimension_numbers<[1], [0], [0], [1], [0, 0, 1, 1], [], []>} : vector<16x128xf32>, vector<128x256xf32>, vector<16x256xf32> -> vector<16x256xf32>
    %c0_15 = arith.constant 0 : index
    %c0_16 = arith.constant 0 : index
    %17 = vector.load %arg8[%c0_15, %c0_16] : memref<1x256xf32, #tpu.memory_space<vmem>>, vector<1x256xf32>
    %18 = vector.broadcast %17 : vector<1x256xf32> to vector<16x256xf32>
    %19 = arith.addf %16, %18 : vector<16x256xf32>
    %20 = vector.extract_strided_slice %19 {offsets = [0, 0], sizes = [16, 128], strides = [1, 1]} : vector<16x256xf32> to vector<16x128xf32>
    %21 = vector.extract_strided_slice %19 {offsets = [0, 128], sizes = [16, 128], strides = [1, 1]} : vector<16x256xf32> to vector<16x128xf32>
    %cst_17 = arith.constant -5.000000e+00 : f32
    %cst_18 = arith.constant 5.000000e+00 : f32
    %22 = vector.broadcast %cst_17 : f32 to vector<16x128xf32>
    %23 = arith.maximumf %22, %21 : vector<16x128xf32>
    %24 = vector.broadcast %cst_18 : f32 to vector<16x128xf32>
    %25 = arith.minimumf %24, %23 : vector<16x128xf32>
    %cst_19 = arith.constant 5.000000e-01 : f32
    %26 = vector.broadcast %cst_19 : f32 to vector<16x128xf32>
    %27 = arith.mulf %26, %25 : vector<16x128xf32>
    %28 = math.exp %27 : vector<16x128xf32>
    %cst_20 = arith.constant 0.000000e+00 : f32
    %29 = vector.broadcast %cst_20 : f32 to vector<16x128xf32>
    %c0_21 = arith.constant 0 : index
    %c0_22 = arith.constant 0 : index
    %30 = vector.load %arg19[%c0_21, %c0_22] : memref<16x128xf32, #tpu.memory_space<vmem>>, vector<16x128xf32>
    tpu.vector_store %arg19[%c0_21, %c0_22], %29 {strides = array<i32>} : memref<16x128xf32, #tpu.memory_space<vmem>>, vector<16x128xf32>,
    %c0_23 = arith.constant 0 : index
    %c0_24 = arith.constant 0 : index
    %31 = vector.load %arg2[%c0_23, %c0_24] : memref<16x5xf32, #tpu.memory_space<vmem>>, vector<16x5xf32>
    %c0_25 = arith.constant 0 : index
    %c0_26 = arith.constant 0 : index
    %32 = vector.load %arg19[%c0_25, %c0_26] : memref<16x128xf32, #tpu.memory_space<vmem>>, vector<16x5xf32>
    tpu.vector_store %arg19[%c0_25, %c0_26], %31 {strides = array<i32>} : memref<16x128xf32, #tpu.memory_space<vmem>>, vector<16x5xf32>,
    %c0_27 = arith.constant 0 : index
    %c0_28 = arith.constant 0 : index
    %33 = vector.load %arg19[%c0_27, %c0_28] : memref<16x128xf32, #tpu.memory_space<vmem>>, vector<16x128xf32>
    %34 = arith.mulf %33, %28 : vector<16x128xf32>
    %35 = arith.addf %20, %34 : vector<16x128xf32>
    %c0_29 = arith.constant 0 : index
    %c0_30 = arith.constant 0 : index
    %36 = vector.load %arg9[%c0_29, %c0_30] : memref<128x128xf32, #tpu.memory_space<vmem>>, vector<128x128xf32>
    %cst_31 = arith.constant dense<0.000000e+00> : vector<16x128xf32>
    %37 = tpu.matmul %35, %36, %cst_31 {dimension_numbers = #tpu.dot_dimension_numbers<[1], [0], [0], [1], [0, 0, 1, 1], [], []>} : vector<16x128xf32>, vector<128x128xf32>, vector<16x128xf32> -> vector<16x128xf32>
    %c0_32 = arith.constant 0 : index
    %c0_33 = arith.constant 0 : index
    %38 = vector.load %arg10[%c0_32, %c0_33] : memref<1x128xf32, #tpu.memory_space<vmem>>, vector<1x128xf32>
    %39 = vector.broadcast %38 : vector<1x128xf32> to vector<16x128xf32>
    %40 = arith.addf %37, %39 : vector<16x128xf32>
    %cst_34 = arith.constant 0.000000e+00 : f32
    %41 = vector.broadcast %cst_34 : f32 to vector<16x128xf32>
    %42 = arith.maximumf %40, %41 : vector<16x128xf32>
    %c0_35 = arith.constant 0 : index
    %c0_36 = arith.constant 0 : index
    %43 = vector.load %arg11[%c0_35, %c0_36] : memref<128x128xf32, #tpu.memory_space<vmem>>, vector<128x128xf32>
    %cst_37 = arith.constant dense<0.000000e+00> : vector<16x128xf32>
    %44 = tpu.matmul %42, %43, %cst_37 {dimension_numbers = #tpu.dot_dimension_numbers<[1], [0], [0], [1], [0, 0, 1, 1], [], []>} : vector<16x128xf32>, vector<128x128xf32>, vector<16x128xf32> -> vector<16x128xf32>
    %c0_38 = arith.constant 0 : index
    %c0_39 = arith.constant 0 : index
    %45 = vector.load %arg12[%c0_38, %c0_39] : memref<1x128xf32, #tpu.memory_space<vmem>>, vector<1x128xf32>
    %46 = vector.broadcast %45 : vector<1x128xf32> to vector<16x128xf32>
    %47 = arith.addf %44, %46 : vector<16x128xf32>
    %cst_40 = arith.constant 0.000000e+00 : f32
    %48 = vector.broadcast %cst_40 : f32 to vector<16x128xf32>
    %49 = arith.maximumf %47, %48 : vector<16x128xf32>
    %c0_41 = arith.constant 0 : index
    %c0_42 = arith.constant 0 : index
    %50 = vector.load %arg13[%c0_41, %c0_42] : memref<128x32xf32, #tpu.memory_space<vmem>>, vector<128x32xf32>
    %cst_43 = arith.constant dense<0.000000e+00> : vector<16x32xf32>
    %51 = tpu.matmul %49, %50, %cst_43 {dimension_numbers = #tpu.dot_dimension_numbers<[1], [0], [0], [1], [0, 0, 1, 1], [], []>} : vector<16x128xf32>, vector<128x32xf32>, vector<16x32xf32> -> vector<16x32xf32>
    %c0_44 = arith.constant 0 : index
    %c0_45 = arith.constant 0 : index
    %52 = vector.load %arg14[%c0_44, %c0_45] : memref<1x32xf32, #tpu.memory_space<vmem>>, vector<1x32xf32>
    %53 = vector.broadcast %52 : vector<1x32xf32> to vector<16x32xf32>
    %54 = arith.addf %51, %53 : vector<16x32xf32>
    %c0_46 = arith.constant 0 : index
    %c0_47 = arith.constant 0 : index
    %55 = vector.load %arg17[%c0_46, %c0_47] : memref<16x32xf32, #tpu.memory_space<vmem>>, vector<16x32xf32>
    tpu.vector_store %arg17[%c0_46, %c0_47], %54 {strides = array<i32>} : memref<16x32xf32, #tpu.memory_space<vmem>>, vector<16x32xf32>,
    %c0_48 = arith.constant 0 : index
    %c0_49 = arith.constant 0 : index
    %56 = vector.load %arg15[%c0_48, %c0_49] : memref<128x128xf32, #tpu.memory_space<vmem>>, vector<128x128xf32>
    %cst_50 = arith.constant dense<0.000000e+00> : vector<16x128xf32>
    %57 = tpu.matmul %25, %56, %cst_50 {dimension_numbers = #tpu.dot_dimension_numbers<[1], [0], [0], [1], [0, 0, 1, 1], [], []>} : vector<16x128xf32>, vector<128x128xf32>, vector<16x128xf32> -> vector<16x128xf32>
    %58 = arith.addf %20, %57 : vector<16x128xf32>
    %c0_51 = arith.constant 0 : index
    %c0_52 = arith.constant 0 : index
    %59 = vector.load %arg16[%c0_51, %c0_52] : memref<128x128xf32, #tpu.memory_space<vmem>>, vector<128x128xf32>
    %cst_53 = arith.constant dense<0.000000e+00> : vector<16x128xf32>
    %60 = tpu.matmul %35, %59, %cst_53 {dimension_numbers = #tpu.dot_dimension_numbers<[1], [0], [0], [1], [0, 0, 1, 1], [], []>} : vector<16x128xf32>, vector<128x128xf32>, vector<16x128xf32> -> vector<16x128xf32>
    %61 = arith.addf %58, %60 : vector<16x128xf32>
    %c0_54 = arith.constant 0 : index
    %c0_55 = arith.constant 0 : index
    %62 = vector.load %arg18[%c0_54, %c0_55] : memref<16x128xf32, #tpu.memory_space<vmem>>, vector<16x128xf32>
    tpu.vector_store %arg18[%c0_54, %c0_55], %61 {strides = array<i32>} : memref<16x128xf32, #tpu.memory_space<vmem>>, vector<16x128xf32>,
    return
  }
  func.func @transform_0(%arg0: i32) -> (i32, i32) {
    %c0_i32 = arith.constant 0 : i32
    %c0_i32_0 = arith.constant 0 : i32
    return %arg0, %c0_i32 : i32, i32
  }
  func.func @transform_1(%arg0: i32) -> (i32, i32) {
    %c0_i32 = arith.constant 0 : i32
    %c0_i32_0 = arith.constant 0 : i32
    return %arg0, %c0_i32 : i32, i32
  }
  func.func @transform_2(%arg0: i32) -> (i32, i32) {
    %c0_i32 = arith.constant 0 : i32
    %c0_i32_0 = arith.constant 0 : i32
    %c0_i32_1 = arith.constant 0 : i32
    return %c0_i32, %c0_i32_0 : i32, i32
  }
  func.func @transform_3(%arg0: i32) -> (i32, i32) {
    %c0_i32 = arith.constant 0 : i32
    %c0_i32_0 = arith.constant 0 : i32
    %c0_i32_1 = arith.constant 0 : i32
    return %c0_i32, %c0_i32_0 : i32, i32
  }
  func.func @transform_4(%arg0: i32) -> (i32, i32) {
    %c0_i32 = arith.constant 0 : i32
    %c0_i32_0 = arith.constant 0 : i32
    %c0_i32_1 = arith.constant 0 : i32
    return %c0_i32, %c0_i32_0 : i32, i32
  }
  func.func @transform_5(%arg0: i32) -> (i32, i32) {
    %c0_i32 = arith.constant 0 : i32
    %c0_i32_0 = arith.constant 0 : i32
    %c0_i32_1 = arith.constant 0 : i32
    return %c0_i32, %c0_i32_0 : i32, i32
  }
  func.func @transform_6(%arg0: i32) -> (i32, i32) {
    %c0_i32 = arith.constant 0 : i32
    %c0_i32_0 = arith.constant 0 : i32
    %c0_i32_1 = arith.constant 0 : i32
    return %c0_i32, %c0_i32_0 : i32, i32
  }
  func.func @transform_7(%arg0: i32) -> (i32, i32) {
    %c0_i32 = arith.constant 0 : i32
    %c0_i32_0 = arith.constant 0 : i32
    %c0_i32_1 = arith.constant 0 : i32
    return %c0_i32, %c0_i32_0 : i32, i32
  }
  func.func @transform_8(%arg0: i32) -> (i32, i32) {
    %c0_i32 = arith.constant 0 : i32
    %c0_i32_0 = arith.constant 0 : i32
    %c0_i32_1 = arith.constant 0 : i32
    return %c0_i32, %c0_i32_0 : i32, i32
  }
  func.func @transform_9(%arg0: i32) -> (i32, i32) {
    %c0_i32 = arith.constant 0 : i32
    %c0_i32_0 = arith.constant 0 : i32
    %c0_i32_1 = arith.constant 0 : i32
    return %c0_i32, %c0_i32_0 : i32, i32
  }
  func.func @transform_10(%arg0: i32) -> (i32, i32) {
    %c0_i32 = arith.constant 0 : i32
    %c0_i32_0 = arith.constant 0 : i32
    %c0_i32_1 = arith.constant 0 : i32
    return %c0_i32, %c0_i32_0 : i32, i32
  }
  func.func @transform_11(%arg0: i32) -> (i32, i32) {
    %c0_i32 = arith.constant 0 : i32
    %c0_i32_0 = arith.constant 0 : i32
    %c0_i32_1 = arith.constant 0 : i32
    return %c0_i32, %c0_i32_0 : i32, i32
  }
  func.func @transform_12(%arg0: i32) -> (i32, i32) {
    %c0_i32 = arith.constant 0 : i32
    %c0_i32_0 = arith.constant 0 : i32
    %c0_i32_1 = arith.constant 0 : i32
    return %c0_i32, %c0_i32_0 : i32, i32
  }
  func.func @transform_13(%arg0: i32) -> (i32, i32) {
    %c0_i32 = arith.constant 0 : i32
    %c0_i32_0 = arith.constant 0 : i32
    %c0_i32_1 = arith.constant 0 : i32
    return %c0_i32, %c0_i32_0 : i32, i32
  }
  func.func @transform_14(%arg0: i32) -> (i32, i32) {
    %c0_i32 = arith.constant 0 : i32
    %c0_i32_0 = arith.constant 0 : i32
    %c0_i32_1 = arith.constant 0 : i32
    return %c0_i32, %c0_i32_0 : i32, i32
  }
  func.func @transform_15(%arg0: i32) -> (i32, i32) {
    %c0_i32 = arith.constant 0 : i32
    %c0_i32_0 = arith.constant 0 : i32
    %c0_i32_1 = arith.constant 0 : i32
    return %c0_i32, %c0_i32_0 : i32, i32
  }
  func.func @transform_16(%arg0: i32) -> (i32, i32) {
    %c0_i32 = arith.constant 0 : i32
    %c0_i32_0 = arith.constant 0 : i32
    return %arg0, %c0_i32 : i32, i32
  }
  func.func @transform_17(%arg0: i32) -> (i32, i32) {
    %c0_i32 = arith.constant 0 : i32
    %c0_i32_0 = arith.constant 0 : i32
    return %arg0, %c0_i32 : i32, i32
  }
}

</mosaic_0001>

<bundles_post_ra>
// kernel: tpu_custom_call.1
= control target key start
LH: loop header
LB: loop body
LE: loop exit
PB: predicated region body
PF: predicated region fallthrough
CT: control target
= control target key end

     0   :  { %s3159_s0 = inlined_call_operand.vmem [shape: f32[64,32], index: 0, kind: input, shape index: {}]   ;;  %s3160_s1 = inlined_call_operand.vmem [shape: f32[64,5], index: 1, kind: input, shape index: {}]   ;;  %s3161_s2 = inlined_call_operand.vmem [shape: f32[32,128], index: 2, kind: input, shape index: {}]   ;;  %s3162_s3 = inlined_call_operand.vmem [shape: f32[1,128], index: 3, kind: input, shape index: {}]   ;;  %s3163_s4 = inlined_call_operand.hbm [shape: f32[128,128], index: 4, kind: input, shape index: {}]   ;;  %s3164_s5 = inlined_call_operand.vmem [shape: f32[1,128], index: 5, kind: input, shape index: {}]   ;;  %s3165_s6 = inlined_call_operand.vmem [shape: f32[128,256], index: 6, kind: input, shape index: {}]   ;;  %s3166_s7 = inlined_call_operand.vmem [shape: f32[1,256], index: 7, kind: input, shape index: {}]   ;;  %s3167_s8 = inlined_call_operand.hbm [shape: f32[128,128], index: 8, kind: input, shape index: {}]   ;;  %s3168_s9 = inlined_call_operand.vmem [shape: f32[1,128], index: 9, kind: input, shape index: {}]   ;;  %s3169_s10 = inlined_call_operand.hbm [shape: f32[128,128], index: 10, kind: input, shape index: {}]   ;;  %s3170_s11 = inlined_call_operand.vmem [shape: f32[1,128], index: 11, kind: input, shape index: {}]   ;;  %s3171_s12 = inlined_call_operand.vmem [shape: f32[128,32], index: 12, kind: input, shape index: {}]   ;;  %s3172_s13 = inlined_call_operand.vmem [shape: f32[1,32], index: 13, kind: input, shape index: {}]   ;;  %s3173_s14 = inlined_call_operand.hbm [shape: f32[128,128], index: 14, kind: input, shape index: {}]   ;;  %s3174_s15 = inlined_call_operand.hbm [shape: f32[128,128], index: 15, kind: input, shape index: {}]   ;;  %s3175_s16 = inlined_call_operand.vmem [shape: f32[64,32], index: 16, kind: output, shape index: {0}]   ;;  %s3176_s17 = inlined_call_operand.hbm [shape: f32[64,128], index: 17, kind: output, shape index: {1}]  }
   0x1   :  { %3189 = sst [smem:[#allocation24_spill]] %s3159_s0 }
   0x2   :  { %3190 = sst [smem:[#allocation25_spill]] %s3160_s1 }
   0x3   :  { %3191 = sst [smem:[#allocation26_spill]] %s3167_s8 }
   0x4   :  { %3192 = sst [smem:[#allocation27_spill]] %s3170_s11 }
   0x5   :  { %3193 = sst [smem:[#allocation28_spill]] %s3172_s13 }
   0x6   :  { %3194 = sst [smem:[#allocation29_spill]] %s3175_s16 }
   0x7   :  { %3195 = sst [smem:[#allocation30_spill]] %s3176_s17 }
   0x8   :  { %23 = vsyncpa [#allocation4], 0 }
   0x9   :  { %24 = vsyncpa [#allocation7], 0 }
   0xa   :  { %25 = vsyncpa [#allocation10], 0 }
   0xb   :  { %26 = vsyncpa [#allocation5], 0 }
   0xc   :  { %28 = vsyncpa [#allocation5 + $0x1], 0  ;;  %s2683_s24 = smov 0   ;;  %s2685_s25 = smov 0  }
   0xd   :  { %s2687_s26 = smov 0   ;;  %s2689_s27 = smov 0  }
   0xe LB: > { %3196 = sst [smem:[#allocation17_spill]] %s2568_s24  ;;  %s2704_s28 = sadd.s32 4294967295, %s2580_s27   ;;  %s2580_s27 = sphi %s2689_s27, %s3228_s27   ;;  %s2576_s26 = sphi %s2687_s26, %s3230_s26   ;;  %s2572_s25 = sphi %s2685_s25, %s3232_s25   ;;  %s2568_s24 = sphi %s2683_s24, %s3231_s24  }
   0xf   : > { %3197 = sst [smem:[#allocation18_spill]] %s2576_s26  ;;  %s1660_s29 = sadd.s32 4294967294, %s2580_s27  }
  0x10   : > { %3198 = sst [smem:[#allocation19_spill]] %s2580_s27  ;;  %s2708_s0 = sadd.s32 1, %s2580_s27  }
  0x11   : > { %3199 = sst [smem:[#allocation20_spill]] %s2708_s0  ;;  %s413_s30 = sadd.s32 1, %s2576_s26 }
  0x12   : > { %s410_s18 = ssub.s32 %s2580_s27, %s2708_s0  ;;  %p423_p0 = scmp.ne.s32.totalorder %s2576_s26, %s2572_s25 }
  0x13   : > { %p411_p1 = scmp.eq.s32.totalorder %s410_s18, 0  ;;  %p424_p2 = scmp.eq.s32.totalorder %s2704_s28, 3 }
  0x14   : > { %p429_p3 = scmp.ne.s32.totalorder %s2572_s25, %s2568_s24  ;;  %p430_p4 = scmp.eq.s32.totalorder %s1660_s29, 3 }
  0x15   : > { %s2719_s19 = scalar_select %p411_p1, %s2576_s26, %s413_s30  }
  0x16   : > { %p2721_p5 = por %p424_p2, %p423_p0  ;;  %p2725_p6 = por %p430_p4, %p429_p3 }
  0x17   : > { %3200 = sst [smem:[#allocation21_spill]] %s2719_s19  ;;  %p1661_p7 = scmp.ge.s32.totalorder %s2580_s27, 1 }
  0x18   : > { %s3201_s1 = scalar_select %p2721_p5, 1, 0 }
  0x19   : > { %s3203_s20 = scalar_select %p2725_p6, 1, 0 }
  0x1a   : > { %3202 = sst [smem:[#allocation22_spill]] %s3201_s1  ;;  %p437_p8 = scmp.lt.s32.totalorder %s2580_s27, 5 }
  0x1b   : > { %3204 = sst [smem:[#allocation23_spill]] %s3203_s20  ;;  %p3183_p9 = scmp.eq.s32.totalorder %s2704_s28, 0 }
  0x1c   : > { %p2732_p10 = pnand %p1661_p7, %p437_p8  ;;  %s2582_s22 = smov [#allocation6]  }
  0x1d   : > { %s477_s23 = sshll.u32 %s2582_s22, 4  ;;  %s2583_s30 = smov [#allocation9]   ;;  %s2738_s23 = int_to_ptr.vmem [resolvable:$true] %s477_s23 }
  0x1e   : > { %s3205_s21 = scalar_select %p2732_p10, 1, 0 }
  0x1f   : > { %p2289_p11 = pneg %p2732_p10  ;;  %s515_s18 = sshll.u32 %s2583_s30, 4  ;;  %s2746_s18 = int_to_ptr.vmem [resolvable:$true] %s515_s18 }
  0x20   : > { %s2584_s19 = smov [#allocation3]   ;;  %s3207_s8 = sld [smem:[#allocation26_spill]] }
  0x21   : > { %p2742_p12 = pnand %p3183_p9, %p2289_p11  ;;  %s2748_s26 = sshll.u32 %s2584_s19, 4  ;;  %s456_s26 = int_to_ptr.vmem [resolvable:$true] %s2748_s26 }
  0x23   : > { %p2758_p0 = pneg %p2742_p12 }
  0x26   : > { %s2366_s24 = scalar_lea.hbm %s3207_s8, 2048 }
  0x27   : > { %p2367_p13 = scmp.ne.s32.totalorder %s3207_s8, %s2366_s24  ;;  %p2373_p3 = scmp.lt.u32.totalorder %s2366_s24, %s3207_s8 }
  0x29   : > { %p2369_p1 = pnand %p2758_p0, %p2367_p13 }
  0x2b   : > { %p2370_p2 = pneg %p2369_p1 }
  0x2d   : > { %p2375_p4 = pnand %p2373_p3, %p2370_p2 }
  0x2f   : > { %2378 = shalt.err (!%p2375_p4)
}
  0x30   : > { %s2379_s27 = scalar_lea.vmem %s2738_s23, 2048  ;;  %p2387_p9 = scmp.lt.s32.totalorder %s2738_s23, %s2738_s23 }
  0x31   : > { %p2380_p7 = scmp.ne.s32.totalorder %s2738_s23, %s2379_s27  ;;  %p2388_p6 = scmp.lt.s32.totalorder %s2379_s27, %s2379_s27 }
  0x33   : > { %p2382_p8 = pnand %p2380_p7, %p2758_p0  ;;  %p2389_p13 = por %p2388_p6, %p2387_p9 }
  0x35   : > { %p2383_p11 = pneg %p2382_p8 }
  0x37   : > { %p2390_p1 = pnand %p2389_p13, %p2383_p11 }
  0x39   : > { %2393 = shalt.err (!%p2390_p1)
}
  0x3a   : > { %s2585_s0 = smov 128   ;;  %s2586_s24 = smov 8  }
  0x3b   : > { %2295 = dma.hbm_to_vmem [thread:$0]  (!%p2742_p12), %s3207_s8, 2048, %s2738_s23, [#allocation7], %s2585_s0, %s2585_s0, %s2586_s24  }
  0x3c   : > { %s2394_s27 = scalar_lea.hbm %s3173_s14, 2048 }
  0x3d   : > { %p2395_p6 = scmp.ne.s32.totalorder %s3173_s14, %s2394_s27  ;;  %p2401_p3 = scmp.lt.u32.totalorder %s2394_s27, %s3173_s14 }
  0x3f   : > { %p2397_p9 = pnand %p2395_p6, %p2758_p0 }
  0x41   : > { %p2398_p2 = pneg %p2397_p9 }
  0x43   : > { %p2403_p4 = pnand %p2401_p3, %p2398_p2 }
  0x45   : > { %2406 = shalt.err (!%p2403_p4)
}
  0x46   : > { %s2407_s23 = scalar_lea.vmem %s2746_s18, 2048  ;;  %p2415_p13 = scmp.lt.s32.totalorder %s2746_s18, %s2746_s18 }
  0x47   : > { %p2408_p7 = scmp.ne.s32.totalorder %s2746_s18, %s2407_s23  ;;  %p2416_p1 = scmp.lt.s32.totalorder %s2407_s23, %s2407_s23 }
  0x49   : > { %p2410_p8 = pnand %p2408_p7, %p2758_p0  ;;  %p2417_p6 = por %p2416_p1, %p2415_p13 }
  0x4b   : > { %p2411_p11 = pneg %p2410_p8 }
  0x4d   : > { %p2418_p9 = pnand %p2417_p6, %p2411_p11 }
  0x4f   : > { %2421 = shalt.err (!%p2418_p9)
}
  0x50   : > { %2301 = dma.hbm_to_vmem [thread:$0]  (!%p2742_p12), %s3173_s14, 2048, %s2746_s18, [#allocation10], %s2585_s0, %s2585_s0, %s2586_s24  }
  0x51   : > { %s2422_s20 = scalar_lea.hbm %s3163_s4, 2048 }
  0x52   : > { %p2423_p2 = scmp.ne.s32.totalorder %s3163_s4, %s2422_s20  ;;  %p2429_p7 = scmp.lt.u32.totalorder %s2422_s20, %s3163_s4 }
  0x54   : > { %p2425_p3 = pnand %p2423_p2, %p2758_p0 }
  0x56   : > { %p2426_p4 = pneg %p2425_p3 }
  0x58   : > { %p2431_p8 = pnand %p2429_p7, %p2426_p4 }
  0x5a   : > { %2434 = shalt.err (!%p2431_p8)
}
  0x5b   : > { %s2435_s23 = scalar_lea.vmem %s456_s26, 2048  ;;  %p2443_p6 = scmp.lt.s32.totalorder %s456_s26, %s456_s26 }
  0x5c   : > { %p2436_p11 = scmp.ne.s32.totalorder %s456_s26, %s2435_s23  ;;  %p2444_p9 = scmp.lt.s32.totalorder %s2435_s23, %s2435_s23 }
  0x5e   : > { %p2438_p13 = pnand %p2436_p11, %p2758_p0  ;;  %p2445_p5 = por %p2444_p9, %p2443_p6 }
  0x60   : > { %p2439_p1 = pneg %p2438_p13 }
  0x62   : > { %p2446_p10 = pnand %p2445_p5, %p2439_p1 }
  0x64   : > { %2449 = shalt.err (!%p2446_p10)
}
  0x65   : > { %2292 = dma.hbm_to_vmem [thread:$0]  (!%p2742_p12), %s3163_s4, 2048, %s456_s26, [#allocation4], %s2585_s0, %s2585_s0, %s2586_s24  }
  0x66   : > { %s2587_s13 = smov [#allocation8]   ;;  %s2588_s1 = smov [#allocation11]  }
  0x67   : > { %s493_s17 = sshll.u32 %s2587_s13, 4  ;;  %s528_s20 = sshll.u32 %s2588_s1, 4  ;;  %s494_s17 = int_to_ptr.vmem [resolvable:$true] %s493_s17  ;;  %s529_s20 = int_to_ptr.vmem [resolvable:$true] %s528_s20 }
  0x68   : > { %s2450_s19 = scalar_lea.hbm %s3169_s10, 2048 }
  0x69   : > { %p2451_p5 = scmp.ne.s32.totalorder %s3169_s10, %s2450_s19  ;;  %p2457_p3 = scmp.lt.u32.totalorder %s2450_s19, %s3169_s10 }
  0x6b   : > { %p2453_p10 = pnand %p2451_p5, %p2758_p0 }
  0x6d   : > { %p2454_p2 = pneg %p2453_p10 }
  0x6f   : > { %p2459_p4 = pnand %p2457_p3, %p2454_p2 }
  0x71   : > { %2462 = shalt.err (!%p2459_p4)
}
  0x72   : > { %s2463_s26 = scalar_lea.vmem %s494_s17, 2048  ;;  %p2471_p13 = scmp.lt.s32.totalorder %s494_s17, %s494_s17 }
  0x73   : > { %p2464_p7 = scmp.ne.s32.totalorder %s494_s17, %s2463_s26  ;;  %p2472_p1 = scmp.lt.s32.totalorder %s2463_s26, %s2463_s26 }
  0x75   : > { %p2466_p8 = pnand %p2464_p7, %p2758_p0  ;;  %p2473_p6 = por %p2472_p1, %p2471_p13 }
  0x77   : > { %p2467_p11 = pneg %p2466_p8 }
  0x79   : > { %p2474_p9 = pnand %p2473_p6, %p2467_p11 }
  0x7b   : > { %2477 = shalt.err (!%p2474_p9)
}
  0x7c   : > { %2298 = dma.hbm_to_vmem [thread:$0]  (!%p2742_p12), %s3169_s10, 2048, %s494_s17, [#allocation7], %s2585_s0, %s2585_s0, %s2586_s24  }
  0x7d   : > { %s2478_s22 = scalar_lea.hbm %s3174_s15, 2048 }
  0x7e   : > { %p2479_p5 = scmp.ne.s32.totalorder %s3174_s15, %s2478_s22  ;;  %p2485_p3 = scmp.lt.u32.totalorder %s2478_s22, %s3174_s15 }
  0x80   : > { %p2481_p10 = pnand %p2479_p5, %p2758_p0 }
  0x82   : > { %p2482_p2 = pneg %p2481_p10 }
  0x84   : > { %p2487_p4 = pnand %p2485_p3, %p2482_p2 }
  0x86   : > { %2490 = shalt.err (!%p2487_p4)
}
  0x87   : > { %s2491_s18 = scalar_lea.vmem %s529_s20, 2048  ;;  %p2499_p13 = scmp.lt.s32.totalorder %s529_s20, %s529_s20 }
  0x88   : > { %p2492_p7 = scmp.ne.s32.totalorder %s529_s20, %s2491_s18  ;;  %p2500_p1 = scmp.lt.s32.totalorder %s2491_s18, %s2491_s18 }
  0x8a   : > { %p2494_p8 = pnand %p2492_p7, %p2758_p0  ;;  %p2501_p6 = por %p2500_p1, %p2499_p13 }
  0x8c   : > { %p2495_p11 = pneg %p2494_p8 }
  0x8e   : > { %p2502_p9 = pnand %p2501_p6, %p2495_p11 }
  0x90   : > { %2505 = shalt.err (!%p2502_p9)
}
  0x91   : > { %2304 = dma.hbm_to_vmem [thread:$0]  (!%p2742_p12), %s3174_s15, 2048, %s529_s20, [#allocation10], %s2585_s0, %s2585_s0, %s2586_s24  }
  0x92   : > { %p3209_p5 = scmp.ne.s32.totalorder %s3205_s21, 0 }
  0x93   : > { %p3210_p0 = scmp.eq.s32.totalorder (!%p3209_p5), %s2704_s28, 0 }
  0x94   : > { %562 = sbr.rel (%p3209_p5) target bundleno = 1500 (0x5dc), region = 84 }
  0x9b   : > { %2551 = dma.done.wait (%p3210_p0), [#allocation4], 2048   ;;  %p3211_p10 = pmov %p3210_p0 }
  0x9c   : > { %p3212_p2 = pmov %p3210_p0 }
  0x9d   : > { %2553 = vsyncadd (%p3211_p10), [#allocation4], 4294965248 }
  0x9e   : > { %2555 = dma.done.wait (%p3212_p2), [#allocation7], 4096   ;;  %p3213_p3 = pmov %p3210_p0 }
  0x9f   : > { %p3214_p4 = pmov %p3210_p0 }
  0xa0   : > { %2557 = vsyncadd (%p3213_p3), [#allocation7], 4294963200 }
  0xa1   : > { %2559 = dma.done.wait (%p3214_p4), [#allocation10], 4096   ;;  %p3215_p12 = pmov %p3210_p0 }
  0xa2   : > { %s1675_s16 = sshll.u32 %s2704_s28, 1  ;;  %s3216_s24 = sld [smem:[#allocation24_spill]]  ;;  %vm672_vm0 = vcmask 261120   ;;  %v661_v0 = vld [vmem:[%s3161_s2] sm:$0xff]  ;;  %v662_v1 = vld [vmem:[%s3161_s2 + $0x8] sm:$0xff]  ;;  %v663_v2 = vld [vmem:[%s3161_s2 + $0x10] sm:$0xff] }
  0xa3   : > { %2561 = vsyncadd (%p3215_p12), [#allocation10], 4294963200  ;;  %p641_p7 = scmp.lt.s32.totalorder %s1675_s16, 7  ;;  %v2031_v3 = vpack.c.bf16 %v662_v1, %v661_v0  ;;  %v664_v4 = vld [vmem:[%s3161_s2 + $0x18] sm:$0xff]  ;;  %v756_v7 = vld [vmem:[#allocation3] sm:$0xff]  ;;  %s3217_s22 = sld [smem:[#allocation25_spill]] }
  0xa4   : > { %v2035_v6 = vpack.c.bf16 %v664_v4, %v663_v2  ;;  %v757_v8 = vld [vmem:[#allocation3 + $0x8] sm:$0xff]  ;;  %v758_v10 = vld [vmem:[#allocation3 + $0x10] sm:$0xff]  ;;  %v759_v11 = vld [vmem:[#allocation3 + $0x18] sm:$0xff]  ;;  %vm991_vm1 = vcmask 39936   ;;  %s637_s8 = sand.u32 1, %s2572_s25   ;;  %s3219_s11 = sld [smem:[#allocation22_spill]] }
  0xa5   : > { %s3234_s16 = smov (!%p641_p7, %s1675_s16), 7  ;;  %2032 = vmatprep.subr.bf16.mxu1 %v2031_v3  ;;  %v2039_v9 = vpack.c.bf16 %v757_v8, %v756_v7  ;;  %v2043_v13 = vpack.c.bf16 %v759_v11, %v758_v10  ;;  %v760_v14 = vld [vmem:[#allocation3 + $0x20] sm:$0xff]  ;;  %v761_v15 = vld [vmem:[#allocation3 + $0x28] sm:$0xff]  ;;  %v762_v17 = vld [vmem:[#allocation3 + $0x30] sm:$0xff]  ;;  %s1674_s13 = sshll.u32 %s637_s8, 4 }
  0xa6   : > { %s2887_s21 = sshll.u32 %s3234_s16, 3  ;;  %2034 = vmatpush3.bf16.msra.mxu1 %v2031_v3  ;;  %v2047_v16 = vpack.c.bf16 %v761_v15, %v760_v14  ;;  %v763_v18 = vld [vmem:[#allocation3 + $0x38] sm:$0xff]  ;;  %v764_v20 = vld [vmem:[#allocation3 + $0x40] sm:$0xff]  ;;  %v765_v21 = vld [vmem:[#allocation3 + $0x48] sm:$0xff]  ;;  %s639_s1 = scalar_lea.vmem [#allocation12], %s1674_s13 }
  0xa7   : > { %2036 = vmatprep.subr.bf16.mxu1 %v2035_v6  ;;  %v2051_v19 = vpack.c.bf16 %v763_v18, %v762_v17  ;;  %v2055_v22 = vpack.c.bf16 %v765_v21, %v764_v20  ;;  %v766_v23 = vld [vmem:[#allocation3 + $0x50] sm:$0xff]  ;;  %v767_v24 = vld [vmem:[#allocation3 + $0x58] sm:$0xff]  ;;  %v768_v26 = vld [vmem:[#allocation3 + $0x60] sm:$0xff]  ;;  %s3220_s23 = sld [smem:[#allocation30_spill]]  ;;  %s3109_s17 = scalar_lea.sflag [#allocation5], %s637_s8 }
  0xa8   : > { %s644_s20 = scalar_lea.vmem %s3216_s24, %s2887_s21  ;;  %v2059_v25 = vpack.c.bf16 %v767_v24, %v766_v23  ;;  %v769_v27 = vld [vmem:[#allocation3 + $0x68] sm:$0xff]  ;;  %v770_v29 = vld [vmem:[#allocation3 + $0x70] sm:$0xff]  ;;  %v771_v30 = vld [vmem:[#allocation3 + $0x78] sm:$0xff]  ;;  %s2590_s16 = smov [#allocation12]  }
  0xa9   : > { %v659_v5 = vld [vmem:[%s644_s20] sm:$0xff]  ;;  %v660_v12 = vld [vmem:[%s644_s20 + $0x8] sm:$0xff]  ;;  %v2063_v28 = vpack.c.bf16 %v769_v27, %v768_v26  ;;  %v2067_v31 = vpack.c.bf16 %v771_v30, %v770_v29  ;;  %v859_v33 = vld [vmem:[%s3165_s6 + $0x18] sm:$0xff]  ;;  %s650_s30 = scalar_lea.vmem %s3217_s22, %s2887_s21  ;;  %s3218_s20 = sld [smem:[#allocation27_spill]] }
  0xaa   : > { %1818 = vmatprep.mubr.msk.f32.mxu1 %vm672_vm0, %v659_v5  ;;  %2038 = vmatpush3.bf16.msra.mxu1 %v2035_v6  ;;  %v857_v32 = vld [vmem:[%s3165_s6 + $0x8] sm:$0xff]  ;;  %v856_v34 = vld [vmem:[%s3165_s6] sm:$0xff]  ;;  %v858_v36 = vld [vmem:[%s3165_s6 + $0x10] sm:$0xff]  ;;  %s1511_s22 = sshll.u32 %s639_s1, 4  ;;  %p3221_p11 = scmp.ne.s32.totalorder %s3219_s11, 0  ;;  %s3101_s22 = int_to_ptr.vmem [resolvable:$true] %s1511_s22 }
  0xab   : > { %2040 = vmatprep.subr.bf16.mxu1 %v2039_v9  ;;  %v2071_v35 = vpack.c.bf16 %v859_v33, %v857_v32  ;;  %v861_v37 = vld [vmem:[%s3165_s6 + $0x28] sm:$0xff]  ;;  %v863_v38 = vld [vmem:[%s3165_s6 + $0x38] sm:$0xff]  ;;  %v2073_v39 = vpack.c.bf16 %v858_v36, %v856_v34  ;;  %v860_v41 = vld [vmem:[%s3165_s6 + $0x20] sm:$0xff]  ;;  %s2506_s26 = scalar_lea.vmem %s3101_s22, 256  ;;  %s2510_s29 = sshll.u32 %s2590_s16, 4  ;;  %s2511_s29 = int_to_ptr.vmem [resolvable:$false] %s2510_s29 }
  0xac   : > { %v2075_v40 = vpack.c.bf16 %v863_v38, %v861_v37  ;;  %v862_v42 = vld [vmem:[%s3165_s6 + $0x30] sm:$0xff]  ;;  %v865_v43 = vld [vmem:[%s3165_s6 + $0x48] sm:$0xff]  ;;  %v867_v44 = vld [vmem:[%s3165_s6 + $0x58] sm:$0xff]  ;;  %p2507_p8 = scmp.ne.s32.totalorder %s3101_s22, %s2506_s26  ;;  %s2512_s0 = scalar_lea.vmem %s2511_s29, 512 }
  0xad   : > { %1819 = vmatmul.mubr.msk.f32.vlgmr.msra.gmra.mrb[0].mxu1 %vm672_vm0, %v660_v12  ;;  %2072 = vmatprep.subr.bf16.mxu0 %v2071_v35  ;;  %v2077_v45 = vpack.c.bf16 %v862_v42, %v860_v41  ;;  %v2079_v46 = vpack.c.bf16 %v867_v44, %v865_v43  ;;  %v864_v47 = vld [vmem:[%s3165_s6 + $0x40] sm:$0xff]  ;;  %v866_v48 = vld [vmem:[%s3165_s6 + $0x50] sm:$0xff]  ;;  %v869_v49 = vld [vmem:[%s3165_s6 + $0x68] sm:$0xff]  ;;  %p2513_p6 = scmp.lt.s32.totalorder %s3101_s22, %s2511_s29  ;;  %p2514_p9 = scmp.lt.s32.totalorder %s2512_s0, %s2506_s26 }
  0xae   : > { %2042 = vmatpush3.bf16.msra.mxu1 %v2039_v9  ;;  %2074 = vmatpush1.bf16.msra.mxu0 %v2073_v39  ;;  %v871_v50 = vld [vmem:[%s3165_s6 + $0x78] sm:$0xff]  ;;  %v2081_v51 = vpack.c.bf16 %v866_v48, %v864_v47  ;;  %v868_v53 = vld [vmem:[%s3165_s6 + $0x60] sm:$0xff]  ;;  %v870_v54 = vld [vmem:[%s3165_s6 + $0x70] sm:$0xff]  ;;  %p2508_p13 = pnand %p2507_p8, %p3221_p11 }
  0xaf   : > { %2044 = vmatprep.subr.bf16.mxu1 %v2043_v13  ;;  %2076 = vmatprep.subr.bf16.mxu0 %v2075_v40  ;;  %v2083_v52 = vpack.c.bf16 %v871_v50, %v869_v49  ;;  %v873_v55 = vld [vmem:[%s3165_s6 + $0x88] sm:$0xff]  ;;  %v875_v56 = vld [vmem:[%s3165_s6 + $0x98] sm:$0xff]  ;;  %v2085_v57 = vpack.c.bf16 %v870_v54, %v868_v53  ;;  %v872_v59 = vld [vmem:[%s3165_s6 + $0x80] sm:$0xff]  ;;  %p2515_p5 = por %p2514_p9, %p2513_p6 }
  0xb0   : > { %v2087_v58 = vpack.c.bf16 %v875_v56, %v873_v55  ;;  %v874_v60 = vld [vmem:[%s3165_s6 + $0x90] sm:$0xff]  ;;  %v877_v61 = vld [vmem:[%s3165_s6 + $0xa8] sm:$0xff]  ;;  %v879_v62 = vld [vmem:[%s3165_s6 + $0xb8] sm:$0xff]  ;;  %p2509_p1 = pneg %p2508_p13 }
  0xb1   : > { %v2089_v63 = vpack.c.bf16 %v874_v60, %v872_v59  ;;  %v2091_v0 = vpack.c.bf16 %v879_v62, %v877_v61  ;;  %v876_v1 = vld [vmem:[%s3165_s6 + $0xa0] sm:$0xff]  ;;  %v878_v2 = vld [vmem:[%s3165_s6 + $0xb0] sm:$0xff]  ;;  %v881_v3 = vld [vmem:[%s3165_s6 + $0xc8] sm:$0xff] }
  0xb2   : > { %2046 = vmatpush3.bf16.msra.mxu1 %v2043_v13  ;;  %2078 = vmatpush1.bf16.msra.mxu0 %v2077_v45  ;;  %v883_v4 = vld [vmem:[%s3165_s6 + $0xd8] sm:$0xff]  ;;  %v2093_v5 = vpack.c.bf16 %v878_v2, %v876_v1  ;;  %v880_v7 = vld [vmem:[%s3165_s6 + $0xc0] sm:$0xff]  ;;  %v882_v8 = vld [vmem:[%s3165_s6 + $0xd0] sm:$0xff]  ;;  %p2516_p0 = pnand %p2515_p5, %p2509_p1 }
  0xb3   : > { %2048 = vmatprep.subr.bf16.mxu1 %v2047_v16  ;;  %2080 = vmatprep.subr.bf16.mxu0 %v2079_v46  ;;  %v2095_v6 = vpack.c.bf16 %v883_v4, %v881_v3  ;;  %v2097_v9 = vpack.c.bf16 %v882_v8, %v880_v7  ;;  %v1681_v10 = vld [vmem:[%s3162_s3] ss:$0 sm:$0xff]  ;;  %v885_v17 = vld [vmem:[%s3165_s6 + $0xe8] sm:$0xff]  ;;  %v887_v18 = vld [vmem:[%s3165_s6 + $0xf8] sm:$0xff] }
  0xb4   : > { %v884_v20 = vld [vmem:[%s3165_s6 + $0xe0] sm:$0xff]  ;;  %v886_v21 = vld [vmem:[%s3165_s6 + $0xf0] sm:$0xff]  ;;  %v990_v24 = vld [vmem:[%s650_s30 + $0x8] sm:$0xff] }
  0xb5   : > { %v989_v23 = vld [vmem:[%s650_s30] sm:$0xff]  ;;  %v1000_v26 = vld [vmem:[#allocation6] sm:$0xff]  ;;  %v1001_v27 = vld [vmem:[#allocation6 + $0x8] sm:$0xff]  ;;  %s1695_s30 = sshll.u32 %s2704_s28, 8 }
  0xb6   : > { %2050 = vmatpush3.bf16.msra.mxu1 %v2047_v16  ;;  %2082 = vmatpush1.bf16.msra.mxu0 %v2081_v51  ;;  %v1684_v29 = vld [vmem:[%s3164_s5] ss:$0 sm:$0xff]  ;;  %v1003_v37 = vld [vmem:[#allocation6 + $0x18] sm:$0xff]  ;;  %v1004_v39 = vld [vmem:[#allocation6 + $0x20] sm:$0xff]  ;;  %s3107_s18 = scalar_lea.hbm %s3220_s23, %s1695_s30 }
  0xb7   : > { %2052 = vmatprep.subr.bf16.mxu1 %v2051_v19  ;;  %2084 = vmatprep.subr.bf16.mxu0 %v2083_v52  ;;  %v1002_v36 = vld [vmem:[#allocation6 + $0x10] sm:$0xff]  ;;  %v1005_v40 = vld [vmem:[#allocation6 + $0x28] sm:$0xff]  ;;  %v1007_v43 = vld [vmem:[#allocation6 + $0x38] sm:$0xff] }
  0xb8   : > { %v2107_v38 = vpack.c.bf16 %v1003_v37, %v1002_v36  ;;  %v2111_v41 = vpack.c.bf16 %v1005_v40, %v1004_v39  ;;  %v1006_v42 = vld [vmem:[#allocation6 + $0x30] sm:$0xff]  ;;  %v1008_v45 = vld [vmem:[#allocation6 + $0x40] sm:$0xff]  ;;  %v1009_v46 = vld [vmem:[#allocation6 + $0x48] sm:$0xff] }
  0xb9   : > { %v2115_v44 = vpack.c.bf16 %v1007_v43, %v1006_v42  ;;  %v2119_v47 = vpack.c.bf16 %v1009_v46, %v1008_v45  ;;  %v1010_v48 = vld [vmem:[#allocation6 + $0x50] sm:$0xff]  ;;  %v1011_v49 = vld [vmem:[#allocation6 + $0x58] sm:$0xff]  ;;  %v1012_v50 = vld [vmem:[#allocation6 + $0x60] sm:$0xff] }
  0xba   : > { %2054 = vmatpush3.bf16.msra.mxu1 %v2051_v19  ;;  %2086 = vmatpush1.bf16.msra.mxu0 %v2085_v57  ;;  %v2099_v19 = vpack.c.bf16 %v887_v18, %v885_v17  ;;  %v2123_v51 = vpack.c.bf16 %v1011_v49, %v1010_v48  ;;  %v1013_v52 = vld [vmem:[#allocation6 + $0x68] sm:$0xff]  ;;  %v1014_v54 = vld [vmem:[#allocation6 + $0x70] sm:$0xff]  ;;  %v1015_v55 = vld [vmem:[#allocation6 + $0x78] sm:$0xff] }
  0xbb   : > { %2056 = vmatprep.subr.bf16.mxu1 %v2055_v22  ;;  %2088 = vmatprep.subr.bf16.mxu0 %v2087_v58  ;;  %v2127_v53 = vpack.c.bf16 %v1013_v52, %v1012_v50  ;;  %v2131_v56 = vpack.c.bf16 %v1015_v55, %v1014_v54  ;;  %v1100_v57 = vld [vmem:[#allocation8] sm:$0xff]  ;;  %v1101_v58 = vld [vmem:[#allocation8 + $0x8] sm:$0xff]  ;;  %v1102_v59 = vld [vmem:[#allocation8 + $0x10] sm:$0xff] }
  0xbc   : > { %v2135_v60 = vpack.c.bf16 %v1101_v58, %v1100_v57  ;;  %v1103_v61 = vld [vmem:[#allocation8 + $0x18] sm:$0xff]  ;;  %v1106_v2 = vld [vmem:[#allocation8 + $0x30] sm:$0xff]  ;;  %v1300_v46 = vld [vmem:[#allocation9] sm:$0xff] }
  0xbd   : > { %v2139_v62 = vpack.c.bf16 %v1103_v61, %v1102_v59  ;;  %v1107_v3 = vld [vmem:[#allocation8 + $0x38] sm:$0xff]  ;;  %v1110_v8 = vld [vmem:[#allocation8 + $0x50] sm:$0xff]  ;;  %v1206_v58 = vld [vmem:[%s3171_s12 + $0x30] sm:$0xff] }
  0xbe   : > { %2058 = vmatpush3.bf16.msra.mxu1 %v2055_v22  ;;  %2090 = vmatpush1.bf16.msra.mxu0 %v2089_v63  ;;  %v2101_v22 = vpack.c.bf16 %v886_v21, %v884_v20  ;;  %v1104_v63 = vld [vmem:[#allocation8 + $0x20] sm:$0xff]  ;;  %v2147_v4 = vpack.c.bf16 %v1107_v3, %v1106_v2  ;;  %v888_v17 = vld [vmem:[%s3166_s7] sm:$0x3]  ;;  %v1201_v50 = vld [vmem:[%s3171_s12 + $0x8] sm:$0xff] }
  0xbf   : > { %2060 = vmatprep.subr.bf16.mxu1 %v2059_v25  ;;  %2092 = vmatprep.subr.bf16.mxu0 %v2091_v0  ;;  %v1105_v0 = vld [vmem:[#allocation8 + $0x28] sm:$0xff]  ;;  %v1114_v43 = vld [vmem:[#allocation8 + $0x70] sm:$0xff] }
  0xc0   : > { %v2143_v1 = vpack.c.bf16 %v1105_v0, %v1104_v63  ;;  %v1200_v49 = vld [vmem:[%s3171_s12] sm:$0xff]  ;;  %v1207_v59 = vld [vmem:[%s3171_s12 + $0x38] sm:$0xff]  ;;  %v1210_v0 = vld [vmem:[%s3171_s12 + $0x50] sm:$0xff] }
  0xc1   : > { %v2167_v52 = vpack.c.bf16 %v1201_v50, %v1200_v49  ;;  %v1204_v55 = vld [vmem:[%s3171_s12 + $0x20] sm:$0xff]  ;;  %v1400_v50 = vld [vmem:[#allocation11 + $0x38] sm:$0xff] }
  0xc2   : > { %2062 = vmatpush3.bf16.msra.mxu1 %v2059_v25  ;;  %2094 = vmatpush1.bf16.msra.mxu0 %v2093_v5  ;;  %v2589_v25 = vmov 0.0   ;;  %v1108_v5 = vld [vmem:[#allocation8 + $0x40] sm:$0xff]  ;;  %v1208_v61 = vld [vmem:[%s3171_s12 + $0x40] sm:$0xff] }
  0xc3   : > { %2064 = vmatprep.subr.bf16.mxu1 %v2063_v28  ;;  %2096 = vmatprep.subr.bf16.mxu0 %v2095_v6  ;;  %987 = vst [vmem:[#allocation2] sm:$0xff] %v2589_v25  ;;  %988 = vst [vmem:[#allocation2 + $0x8] sm:$0xff] %v2589_v25  ;;  %v1109_v6 = vld [vmem:[#allocation8 + $0x48] sm:$0xff]  ;;  %v1212_v3 = vld [vmem:[%s3171_s12 + $0x60] sm:$0xff] }
  0xc4   : > { %964 = vmatprep.mubr.f32.mxu0 %v2589_v25  ;;  %992 = vst.msk [vmem:[#allocation2] sm:$0xff] %vm991_vm1, %v989_v23  ;;  %993 = vst.msk [vmem:[#allocation2 + $0x8] sm:$0xff] %vm991_vm1, %v990_v24  ;;  %v2151_v7 = vpack.c.bf16 %v1109_v6, %v1108_v5  ;;  %v1687_v6 = vld [vmem:[%s3168_s9] ss:$0 sm:$0xff] }
  0xc5   : > { %v1399_v49 = vld [vmem:[#allocation11 + $0x30] sm:$0xff] }
  0xc6   : > { %2066 = vmatpush3.bf16.msra.mxu1 %v2063_v28  ;;  %2098 = vmatpush1.bf16.msra.mxu0 %v2097_v9  ;;  %v2103_v28 = vpack.c.bf16 %v1001_v27, %v1000_v26  ;;  %v1111_v9 = vld [vmem:[#allocation8 + $0x58] sm:$0xff] }
  0xc7   : > { %2068 = vmatprep.subr.bf16.mxu1 %v2067_v31  ;;  %2100 = vmatprep.subr.bf16.mxu0 %v2099_v19 }
  0xca   : > { %2070 = vmatpush3.bf16.msra.mxu1 %v2067_v31  ;;  %2102 = vmatpush1.bf16.msra.mxu0 %v2101_v22 }
  0xcb   : > { %2104 = vmatprep.subr.bf16.mxu1 %v2103_v28  ;;  %2136 = vmatprep.subr.bf16.mxu0 %v2135_v60  ;;  %v995_v37 = vld [vmem:[#allocation2 + $0x8] sm:$0xff] }
 0x180   : > { %v1820_v11 = vpop.f32.mrb[0].mxu1 }
 0x181   : > { %v751_v12 = vadd.f32 %v1820_v11, %v1681_v10  ;;  %v745_v13 = vpop.f32.mrb[1].mxu1  ;;  %v1112_v11 = vld [vmem:[#allocation8 + $0x60] sm:$0xff] }
 0x182   : > { %v746_v14 = vadd.f32 %v1681_v10, %v745_v13  ;;  %v2155_v10 = vpack.c.bf16 %v1111_v9, %v1110_v8 }
 0x183   : > { %v755_v16 = vmax.f32 %v751_v12, 0.0  ;;  %v1113_v12 = vld [vmem:[#allocation8 + $0x68] sm:$0xff] }
 0x184   : > { %v754_v15 = vmax.f32 %v746_v14, 0.0  ;;  %v2159_v13 = vpack.c.bf16 %v1113_v12, %v1112_v11  ;;  %v890_v14 = vlaneseq  ;;  %v1302_v11 = vld [vmem:[#allocation9 + $0x10] sm:$0xff]  ;;  %v1303_v12 = vld [vmem:[#allocation9 + $0x18] sm:$0xff] }
 0x186   : > { %1853 = vmatprep.mubr.f32.mxu1 %v754_v15  ;;  %v891_v15 = vshrl.u32 %v890_v14, 7 }
 0x187   : > { %1854 = vmatmul.mubr.f32.vlgmr.msra.gmra.mrb[2].mxu1 %v755_v16 }
 0x188   : > { %2106 = vmatpush3.bf16.msra.mxu1 %v2103_v28  ;;  %v896_v16 = vsub.s32 1, %v891_v15 }
 0x189   : > { %2108 = vmatprep.subr.bf16.mxu1 %v2107_v38 }
 0x18a   : > { %v897_v18 = vrot.slane %v888_v17, %v896_v16  ;;  %v1304_v16 = vld [vmem:[#allocation9 + $0x20] sm:$0xff] }
 0x18c   : > { %2110 = vmatpush3.bf16.msra.mxu1 %v2107_v38 }
 0x18d   : > { %2112 = vmatprep.subr.bf16.mxu1 %v2111_v41 }
 0x190   : > { %2114 = vmatpush3.bf16.msra.mxu1 %v2111_v41 }
 0x191   : > { %2116 = vmatprep.subr.bf16.mxu1 %v2115_v44 }
 0x194   : > { %2118 = vmatpush3.bf16.msra.mxu1 %v2115_v44  ;;  %v1115_v44 = vld [vmem:[#allocation8 + $0x78] sm:$0xff] }
 0x195   : > { %2120 = vmatprep.subr.bf16.mxu1 %v2119_v47  ;;  %v2163_v45 = vpack.c.bf16 %v1115_v44, %v1114_v43  ;;  %v1395_v43 = vld [vmem:[#allocation11 + $0x10] sm:$0xff]  ;;  %v1396_v44 = vld [vmem:[#allocation11 + $0x18] sm:$0xff] }
 0x198   : > { %2122 = vmatpush3.bf16.msra.mxu1 %v2119_v47  ;;  %v1301_v47 = vld [vmem:[#allocation9 + $0x8] sm:$0xff] }
 0x199   : > { %2124 = vmatprep.subr.bf16.mxu1 %v2123_v51  ;;  %v2199_v48 = vpack.c.bf16 %v1301_v47, %v1300_v46  ;;  %v1397_v46 = vld [vmem:[#allocation11 + $0x20] sm:$0xff]  ;;  %v1398_v47 = vld [vmem:[#allocation11 + $0x28] sm:$0xff] }
 0x19c   : > { %2126 = vmatpush3.bf16.msra.mxu1 %v2123_v51  ;;  %v1202_v51 = vld [vmem:[%s3171_s12 + $0x10] sm:$0xff] }
 0x19d   : > { %2128 = vmatprep.subr.bf16.mxu1 %v2127_v53 }
 0x1a0   : > { %2130 = vmatpush3.bf16.msra.mxu1 %v2127_v53  ;;  %v1203_v53 = vld [vmem:[%s3171_s12 + $0x18] sm:$0xff] }
 0x1a1   : > { %2132 = vmatprep.subr.bf16.mxu1 %v2131_v56  ;;  %v2171_v54 = vpack.c.bf16 %v1203_v53, %v1202_v51  ;;  %v2243_v51 = vpack.c.bf16 %v1400_v50, %v1399_v49  ;;  %v1402_v53 = vld [vmem:[#allocation11 + $0x48] sm:$0xff] }
 0x1a4   : > { %2134 = vmatpush3.bf16.msra.mxu1 %v2131_v56  ;;  %v1205_v56 = vld [vmem:[%s3171_s12 + $0x28] sm:$0xff] }
 0x1a5   : > { %2168 = vmatprep.subr.bf16.mxu1 %v2167_v52  ;;  %v2175_v57 = vpack.c.bf16 %v1205_v56, %v1204_v55  ;;  %v1403_v55 = vld [vmem:[#allocation11 + $0x50] sm:$0xff]  ;;  %v1404_v56 = vld [vmem:[#allocation11 + $0x58] sm:$0xff] }
 0x25a   : > { %v1855_v30 = vpop.f32.mrb[2].mxu1 }
 0x25b   : > { %v845_v31 = vpop.f32.mrb[3].mxu1  ;;  %v851_v33 = vadd.f32 %v1855_v30, %v1684_v29 }
 0x25c   : > { %v846_v32 = vadd.f32 %v1684_v29, %v845_v31  ;;  %v892_v31 = vsub.s32 0, %v891_v15  ;;  %v2203_v15 = vpack.c.bf16 %v1303_v12, %v1302_v11 }
 0x25d   : > { %v855_v35 = vmax.f32 %v851_v33, 0.0  ;;  %v994_v33 = vld [vmem:[#allocation2] sm:$0xff] }
 0x25e   : > { %v854_v34 = vmax.f32 %v846_v32, 0.0  ;;  %v893_v32 = vrot.slane %v888_v17, %v892_v31  ;;  %v1305_v17 = vld [vmem:[#allocation9 + $0x28] sm:$0xff] }
 0x260   : > { %965 = vmatmul.mubr.f32.vlgmr.msra.gmra.mrb[0].mxu0 %v854_v34 }
 0x261   : > { %970 = vmatprep.mubr.f32.mxu0 %v2589_v25  ;;  %2138 = vmatpush3.bf16.msra.mxu0 %v2135_v60  ;;  %v2179_v60 = vpack.c.bf16 %v1207_v59, %v1206_v58  ;;  %v1407_v58 = vld [vmem:[#allocation11 + $0x70] sm:$0xff]  ;;  %v1408_v59 = vld [vmem:[#allocation11 + $0x78] sm:$0xff] }
 0x262   : > { %2140 = vmatprep.subr.bf16.mxu0 %v2139_v62 }
 0x264   : > { %971 = vmatmul.mubr.f32.gmra.mrb[2].mxu0 %v855_v35 }
 0x265   : > { %2142 = vmatpush3.bf16.msra.mxu0 %v2139_v62  ;;  %v1209_v62 = vld [vmem:[%s3171_s12 + $0x48] sm:$0xff] }
 0x266   : > { %2144 = vmatprep.subr.bf16.mxu0 %v2143_v1  ;;  %v2183_v63 = vpack.c.bf16 %v1209_v62, %v1208_v61  ;;  %v1214_v61 = vld [vmem:[%s3171_s12 + $0x70] sm:$0xff]  ;;  %v1215_v62 = vld [vmem:[%s3171_s12 + $0x78] sm:$0xff] }
 0x269   : > { %2146 = vmatpush3.bf16.msra.mxu0 %v2143_v1  ;;  %v1211_v1 = vld [vmem:[%s3171_s12 + $0x58] sm:$0xff] }
 0x26a   : > { %2148 = vmatprep.subr.bf16.mxu0 %v2147_v4  ;;  %v2187_v2 = vpack.c.bf16 %v1211_v1, %v1210_v0  ;;  %v1688_v0 = vld [vmem:[%s3218_s20] ss:$0 sm:$0xff] }
 0x26d   : > { %2150 = vmatpush3.bf16.msra.mxu0 %v2147_v4  ;;  %v1213_v4 = vld [vmem:[%s3171_s12 + $0x68] sm:$0xff] }
 0x26e   : > { %2152 = vmatprep.subr.bf16.mxu0 %v2151_v7  ;;  %v2191_v5 = vpack.c.bf16 %v1213_v4, %v1212_v3 }
 0x271   : > { %2154 = vmatpush3.bf16.msra.mxu0 %v2151_v7 }
 0x272   : > { %2156 = vmatprep.subr.bf16.mxu0 %v2155_v10 }
 0x275   : > { %2158 = vmatpush3.bf16.msra.mxu0 %v2155_v10 }
 0x276   : > { %2160 = vmatprep.subr.bf16.mxu0 %v2159_v13 }
 0x279   : > { %2162 = vmatpush3.bf16.msra.mxu0 %v2159_v13 }
 0x27a   : > { %2164 = vmatprep.subr.bf16.mxu0 %v2163_v45 }
 0x27d   : > { %2166 = vmatpush3.bf16.msra.mxu0 %v2163_v45  ;;  %v2235_v45 = vpack.c.bf16 %v1396_v44, %v1395_v43 }
 0x27e   : > { %2200 = vmatprep.subr.bf16.mxu0 %v2199_v48 }
 0x333   : > { %v966_v19 = vpop.f32.mrb[0].mxu0 }
 0x334   : > { %v968_v20 = vpop.f32.mrb[1].mxu0  ;;  %v3026_v35 = vadd.f32 %v966_v19, %v893_v32  ;;  %v1306_v19 = vld [vmem:[#allocation9 + $0x30] sm:$0xff] }
 0x335   : > { %v3016_v21 = vadd.f32 %v968_v20, %v897_v18  ;;  %v1307_v20 = vld [vmem:[#allocation9 + $0x38] sm:$0xff] }
 0x337   : > { %v1685_v22 = vclamps-f32 %v3016_v21, 5.0  ;;  %v972_v23 = vpop.f32.mrb[2].mxu0  ;;  %v1313_v21 = vld [vmem:[#allocation9 + $0x68] sm:$0xff] }
 0x338   : > { %v974_v24 = vpop.f32.mrb[3].mxu0  ;;  %v3031_v40 = vadd.f32 %v972_v23, %v893_v32  ;;  %v2211_v23 = vpack.c.bf16 %v1307_v20, %v1306_v19  ;;  %v1312_v32 = vld [vmem:[#allocation9 + $0x60] sm:$0xff] }
 0x339   : > { %v981_v25 = vmul.f32 0.5, %v1685_v22  ;;  %v3021_v26 = vadd.f32 %v974_v24, %v897_v18  ;;  %v2207_v18 = vpack.c.bf16 %v1305_v17, %v1304_v16  ;;  %v1308_v24 = vld [vmem:[#allocation9 + $0x40] sm:$0xff] }
 0x33b   : > { %v983_v27 = vmul.f32 1.442695, %v981_v25  ;;  %v1686_v28 = vclamps-f32 %v3021_v26, 5.0  ;;  %v1309_v25 = vld [vmem:[#allocation9 + $0x48] sm:$0xff]  ;;  %v2251_v26 = vpack.c.bf16 %v1404_v56, %v1403_v55 }
 0x33d   : > { %2362 = vpow2.f32 %v983_v27  ;;  %v982_v29 = vmul.f32 0.5, %v1686_v28  ;;  %v2215_v27 = vpack.c.bf16 %v1309_v25, %v1308_v24 }
 0x33f   : > { %v985_v30 = vmul.f32 1.442695, %v982_v29  ;;  %v1310_v29 = vld [vmem:[#allocation9 + $0x50] sm:$0xff] }
 0x341   : > { %2364 = vpow2.f32 %v985_v30  ;;  %v1311_v30 = vld [vmem:[#allocation9 + $0x58] sm:$0xff] }
 0x342   : > { %v2219_v31 = vpack.c.bf16 %v1311_v30, %v1310_v29 }
 0x347   : > { %v2363_v34 = vpop.eup %2362 }
 0x348   : > { %v996_v36 = vmul.f32 %v2363_v34, %v994_v33  ;;  %v1314_v33 = vld [vmem:[#allocation9 + $0x70] sm:$0xff]  ;;  %v1315_v34 = vld [vmem:[#allocation9 + $0x78] sm:$0xff] }
 0x34a   : > { %v3029_v38 = vadd.f32 %v996_v36, %v3026_v35  ;;  %v2227_v36 = vpack.c.bf16 %v1315_v34, %v1314_v33 }
 0x34b   : > { %v2365_v39 = vpop.eup %2364 }
 0x34c   : > { %1888 = vmatprep.mubr.f32.mxu1 %v3029_v38  ;;  %v997_v41 = vmul.f32 %v2365_v39, %v995_v37  ;;  %v1393_v37 = vld [vmem:[#allocation11] sm:$0xff]  ;;  %v1394_v39 = vld [vmem:[#allocation11 + $0x8] sm:$0xff] }
 0x34e   : > { %v3035_v42 = vadd.f32 %v997_v41, %v3031_v40  ;;  %v2231_v41 = vpack.c.bf16 %v1394_v39, %v1393_v37 }
 0x350   : > { %1889 = vmatmul.mubr.f32.vlgmr.msra.gmra.mrb[4].mxu1 %v3035_v42 }
 0x351   : > { %2170 = vmatpush3.bf16.msra.mxu1 %v2167_v52  ;;  %v1401_v52 = vld [vmem:[#allocation11 + $0x40] sm:$0xff] }
 0x352   : > { %2172 = vmatprep.subr.bf16.mxu1 %v2171_v54 }
 0x355   : > { %2174 = vmatpush3.bf16.msra.mxu1 %v2171_v54  ;;  %v2247_v54 = vpack.c.bf16 %v1402_v53, %v1401_v52 }
 0x356   : > { %2176 = vmatprep.subr.bf16.mxu1 %v2175_v57 }
 0x359   : > { %2178 = vmatpush3.bf16.msra.mxu1 %v2175_v57  ;;  %v1406_v57 = vld [vmem:[#allocation11 + $0x68] sm:$0xff] }
 0x35a   : > { %2180 = vmatprep.subr.bf16.mxu1 %v2179_v60 }
 0x35d   : > { %2182 = vmatpush3.bf16.msra.mxu1 %v2179_v60  ;;  %v2259_v60 = vpack.c.bf16 %v1408_v59, %v1407_v58 }
 0x35e   : > { %2184 = vmatprep.subr.bf16.mxu1 %v2183_v63 }
 0x361   : > { %2186 = vmatpush3.bf16.msra.mxu1 %v2183_v63  ;;  %v2195_v63 = vpack.c.bf16 %v1215_v62, %v1214_v61 }
 0x362   : > { %2188 = vmatprep.subr.bf16.mxu1 %v2187_v2 }
 0x365   : > { %2190 = vmatpush3.bf16.msra.mxu1 %v2187_v2 }
 0x366   : > { %2192 = vmatprep.subr.bf16.mxu1 %v2191_v5 }
 0x369   : > { %2194 = vmatpush3.bf16.msra.mxu1 %v2191_v5 }
 0x36a   : > { %2196 = vmatprep.subr.bf16.mxu1 %v2195_v63 }
 0x36d   : > { %2198 = vmatpush3.bf16.msra.mxu1 %v2195_v63 }
 0x423   : > { %v1890_v7 = vpop.f32.mrb[4].mxu1 }
 0x424   : > { %v1095_v8 = vadd.f32 %v1890_v7, %v1687_v6  ;;  %v1089_v9 = vpop.f32.mrb[5].mxu1 }
 0x425   : > { %v1090_v10 = vadd.f32 %v1687_v6, %v1089_v9 }
 0x426   : > { %v1099_v14 = vmax.f32 %v1095_v8, 0.0 }
 0x427   : > { %v1098_v13 = vmax.f32 %v1090_v10, 0.0 }
 0x429   : > { %1923 = vmatprep.mubr.f32.mxu0 %v1098_v13 }
 0x42a   : > { %1924 = vmatmul.mubr.f32.vlgmr.msra.gmra.mrb[4].mxu0 %v1099_v14 }
 0x42b   : > { %2202 = vmatpush3.bf16.msra.mxu0 %v2199_v48  ;;  %1993 = vmatprep.mubr.f32.mxu0 %v1685_v22  ;;  %v2223_v22 = vpack.c.bf16 %v1313_v21, %v1312_v32  ;;  %v2239_v48 = vpack.c.bf16 %v1398_v47, %v1397_v46 }
 0x42c   : > { %2204 = vmatprep.subr.bf16.mxu0 %v2203_v15 }
 0x42f   : > { %2206 = vmatpush3.bf16.msra.mxu0 %v2203_v15 }
 0x430   : > { %2208 = vmatprep.subr.bf16.mxu0 %v2207_v18 }
 0x433   : > { %2210 = vmatpush3.bf16.msra.mxu0 %v2207_v18 }
 0x434   : > { %2212 = vmatprep.subr.bf16.mxu0 %v2211_v23 }
 0x437   : > { %2214 = vmatpush3.bf16.msra.mxu0 %v2211_v23 }
 0x438   : > { %2216 = vmatprep.subr.bf16.mxu0 %v2215_v27 }
 0x43b   : > { %2218 = vmatpush3.bf16.msra.mxu0 %v2215_v27 }
 0x43c   : > { %2220 = vmatprep.subr.bf16.mxu0 %v2219_v31 }
 0x43f   : > { %2222 = vmatpush3.bf16.msra.mxu0 %v2219_v31 }
 0x440   : > { %2224 = vmatprep.subr.bf16.mxu0 %v2223_v22 }
 0x443   : > { %2226 = vmatpush3.bf16.msra.mxu0 %v2223_v22 }
 0x444   : > { %2228 = vmatprep.subr.bf16.mxu0 %v2227_v36 }
 0x447   : > { %2230 = vmatpush3.bf16.msra.mxu0 %v2227_v36 }
 0x448   : > { %2232 = vmatprep.subr.bf16.mxu0 %v2231_v41 }
 0x44a   : > { %1994 = vmatmul.mubr.f32.vlgmr.msra.gmra.mrb[6].mxu0 %v1686_v28  ;;  %v1405_v28 = vld [vmem:[#allocation11 + $0x60] sm:$0xff] }
 0x44b   : > { %2234 = vmatpush3.bf16.msra.mxu0 %v2231_v41  ;;  %2028 = vmatprep.mubr.f32.mxu0 %v3029_v38  ;;  %v2255_v38 = vpack.c.bf16 %v1406_v57, %v1405_v28 }
 0x44c   : > { %2236 = vmatprep.subr.bf16.mxu0 %v2235_v45 }
 0x44f   : > { %2238 = vmatpush3.bf16.msra.mxu0 %v2235_v45 }
 0x450   : > { %2240 = vmatprep.subr.bf16.mxu0 %v2239_v48 }
 0x453   : > { %2242 = vmatpush3.bf16.msra.mxu0 %v2239_v48 }
 0x454   : > { %2244 = vmatprep.subr.bf16.mxu0 %v2243_v51 }
 0x457   : > { %2246 = vmatpush3.bf16.msra.mxu0 %v2243_v51 }
 0x458   : > { %2248 = vmatprep.subr.bf16.mxu0 %v2247_v54 }
 0x45b   : > { %2250 = vmatpush3.bf16.msra.mxu0 %v2247_v54 }
 0x45c   : > { %2252 = vmatprep.subr.bf16.mxu0 %v2251_v26 }
 0x45f   : > { %2254 = vmatpush3.bf16.msra.mxu0 %v2251_v26 }
 0x460   : > { %2256 = vmatprep.subr.bf16.mxu0 %v2255_v38 }
 0x463   : > { %2258 = vmatpush3.bf16.msra.mxu0 %v2255_v38 }
 0x464   : > { %2260 = vmatprep.subr.bf16.mxu0 %v2259_v60 }
 0x467   : > { %2262 = vmatpush3.bf16.msra.mxu0 %v2259_v60 }
 0x46a   : > { %2029 = vmatmul.mubr.f32.vlgmr.msra.gmra.mrb[6].mxu0 %v3035_v42 }
 0x4fd   : > { %v1925_v1 = vpop.f32.mrb[4].mxu0 }
 0x4fe   : > { %v1195_v2 = vadd.f32 %v1925_v1, %v1688_v0  ;;  %v1189_v3 = vpop.f32.mrb[5].mxu0 }
 0x4ff   : > { %v1190_v4 = vadd.f32 %v1688_v0, %v1189_v3 }
 0x500   : > { %v1199_v5 = vmax.f32 %v1195_v2, 0.0 }
 0x501   : > { %v1198_v42 = vmax.f32 %v1190_v4, 0.0 }
 0x503   : > { %1958 = vmatprep.mubr.f32.mxu1 %v1198_v42 }
 0x504   : > { %1959 = vmatmul.mubr.f32.vlgmr.msra.gmra.mrb[6].mxu1 %v1199_v5 }
 0x53d   : > { %v2030_v6 = vpop.f32.mrb[6].mxu0 }
 0x53e   : > { %v2263_v7 = vadd.f32 %v2030_v6, %v3031_v40  ;;  %v1475_v8 = vpop.f32.mrb[7].mxu0 }
 0x53f   : > { %v2264_v9 = vadd.f32 %v1475_v8, %v3026_v35 }
 0x540   : > { %1487 = vst [vmem:[%s639_s1 + $0x8] sm:$0xff] %v2263_v7 }
 0x541   : > { %1486 = vst [vmem:[%s639_s1] sm:$0xff] %v2264_v9 }
 0x542   : > { %2519 = shalt.err (!%p2516_p0)
}
 0x543   : > { %s2520_s28 = scalar_lea.hbm %s3107_s18, 256  ;;  %s2524_s8 = scalar_lea.hbm %s3220_s23, 1024 }
 0x544   : > { %p2521_p10 = scmp.ne.s32.totalorder %s3107_s18, %s2520_s28  ;;  %p2525_p4 = scmp.lt.u32.totalorder %s3107_s18, %s3220_s23 }
 0x545   : > { %p2526_p12 = scmp.lt.u32.totalorder %s2524_s8, %s2520_s28  ;;  %p2528_p8 = scmp.lt.u32.totalorder %s2520_s28, %s3107_s18 }
 0x546   : > { %p2522_p2 = pnand %p2521_p10, %p3221_p11 }
 0x547   : > { %p2527_p7 = por %p2526_p12, %p2525_p4 }
 0x548   : > { %p2523_p3 = pneg %p2522_p2 }
 0x549   : > { %p2529_p13 = por %p2528_p8, %p2527_p7 }
 0x54b   : > { %p2530_p1 = pnand %p2529_p13, %p2523_p3 }
 0x54d   : > { %2533 = shalt.err (!%p2530_p1)
}
 0x54e   : > { %s2591_s30 = smov 128   ;;  %s2592_s19 = smov 8  }
 0x54f   : > { %2287 = dma.vmem_to_hbm [thread:$0]  (%p3221_p11), %s3101_s22, 256, %s3107_s18, %s3109_s17, %s2591_s30, %s2591_s30, %s2592_s19  }
 0x550   : > { %s3222_s16 = sld [smem:[#allocation28_spill]]  ;;  %s3223_s28 = sld [smem:[#allocation29_spill]] }
 0x556   : > { %v1689_v35 = vld [vmem:[%s3222_s16] ss:$0 sm:$0xff]  ;;  %s656_s24 = scalar_lea.vmem %s3223_s28, %s2887_s21 }
 0x5d7   : > { %v1960_v40 = vpop.f32.mrb[6].mxu1 }
 0x5d8   : > { %v1289_v10 = vpop.f32.mrb[7].mxu1  ;;  %v1295_v12 = vadd.f32 %v1960_v40, %v1689_v35 }
 0x5d9   : > { %v1290_v11 = vadd.f32 %v1689_v35, %v1289_v10 }
 0x5da   : > { %1299 = vst.msk [vmem:[%s656_s24 + $0x8] sm:$0xff] %vm672_vm0, %v1295_v12 }
 0x5db   : > { %1298 = vst.msk [vmem:[%s656_s24] sm:$0xff] %vm672_vm0, %v1290_v11 }
 0x5dc PF: > { %s3224_s20 = sld [smem:[#allocation19_spill]]  ;;  %s3225_s11 = sld [smem:[#allocation17_spill]] }
 0x5dd   : > { %s3226_s22 = sld [smem:[#allocation23_spill]] }
 0x5e2   : > { %p2319_p11 = scmp.ge.s32.totalorder %s3224_s20, 2  ;;  %s1534_s18 = sand.u32 1, %s3225_s11  }
 0x5e3   : > { %p3227_p6 = scmp.ne.s32.totalorder %s3226_s22, 0  ;;  %s1535_s17 = scalar_lea.sflag [#allocation5], %s1534_s18 }
 0x5e5   : > { %p2306_p9 = pnand %p2319_p11, %p3227_p6 }
 0x5e7   : > { %2563 = dma.done.wait (!%p2306_p9), %s1535_s17, 256  }
 0x5e8   : > { %2565 = vsyncadd (!%p2306_p9), %s1535_s17, 4294967040  ;;  %s3228_s27 = sld [smem:[#allocation20_spill]]  ;;  %s3229_s21 = sld [smem:[#allocation18_spill]] }
 0x5e9   : > { %s3230_s26 = sld [smem:[#allocation21_spill]]  ;;  %s3231_s24 = smov %s2572_s25 }
 0x5ee   : > { %p31_p5 = scmp.ge.s32.totalorder %s3228_s27, 6   ;;  %s3232_s25 = smov %s3229_s21 }
 0x5f0   :  { %33 = sbr.rel (!%p31_p5) target bundleno = 14 (0xe), region = 155 }
 0x5f7   :  { %1540 = vsyncpa [#allocation4], 1 }
 0x5f8   :  { %1542 = vsyncpa [#allocation4 + $0x1], 1 }
 0x5f9   :  { %1543 = vsyncpa [#allocation7], 1 }
 0x5fa   :  { %1544 = vsyncpa [#allocation10], 1 }
 0x5fb   :  { %1545 = vsyncpa [#allocation5], 1 }
 0x5fc   :  { %1547 = vsyncpa [#allocation5 + $0x1], 1 }

</bundles_post_ra>
